<compile_context>
chip_gen: v6e
topology: v6e:2x2x1
jax: 0.10.0
libtpu: 0.0.40
codegen_flags: <defaults>
</compile_context>

<pallas_src>
import functools
import jax
import jax.numpy as jnp
from jax.experimental import pallas as pl
from jax.experimental.pallas import tpu as pltpu

LANES = 128
SUBLANES = 8
VMEM_LIMIT_BYTES = 32 * 1024 * 1024  # fits v5e/v6e (128 MiB phys) and v7x (64 MiB/TC)


def _cdiv(a, b):
    return -(-a // b)


def _round_up(x, m):
    return _cdiv(x, m) * m


def _num_tensorcores():
    # 2-way core split only on chips with 2 TensorCores per device (v7x).
    # v5e/v6e are single-TC: a synthetic core axis there is just a serialized
    # extra pass.  (device_kind is used instead of pltpu.get_tpu_info() because
    # its field names are stable across jax versions.)
    try:
        kind = jax.devices()[0].device_kind.lower()
    except Exception:
        return 1
    return 2 if "v7" in kind else 1


def _focal_kernel(p_ref, t_ref, *out_refs, alpha, gamma, num_tiles,
                  tiles_per_core, tail_valid, need_tsum):
    loss_ref = out_refs[0]
    tsum_ref = out_refs[1] if need_tsum else None
    tile_rows, lanes = p_ref.shape
    tile_elems = tile_rows * lanes

    c = pl.program_id(0)                # core-split axis (size 1 on 1-TC chips)
    i = pl.program_id(1)                # streaming / reduction axis
    tile_idx = c * tiles_per_core + i   # un-clamped logical tile index

    @pl.when(i == 0)
    def _init():
        loss_ref[...] = jnp.zeros_like(loss_ref)
        if need_tsum:
            tsum_ref[...] = jnp.zeros_like(tsum_ref)

    x = p_ref[...].astype(jnp.float32)
    t = t_ref[...].astype(jnp.float32)

    # Stable softplus form:  sp = log1p(exp(-|x|));  log1p(exp(-x)) = sp + relu(-x)
    #   ce        = relu(x) - t*x + sp                         (BCE with logits)
    #   modulator = exp(-gamma*t*x - gamma*log1p(exp(-x)))
    #             = exp(-gamma*(t*x + sp + relu(-x)))          (overflow-free)
    sp = jnp.log1p(jnp.exp(-jnp.abs(x)))
    tx = t * x
    ce = jnp.maximum(x, 0.0) - tx + sp
    if gamma == 0.0:
        weighted = alpha * ce
    else:
        # NOTE: for strictly binary targets and integer gamma one exp could be
        # replaced by pl.reciprocal(approx=True)+select (fewer EUP pushes on
        # v7x); not done here so arbitrary (soft) targets keep exact semantics.
        modulator = jnp.exp(-gamma * (tx + sp + jnp.maximum(-x, 0.0)))
        weighted = alpha * (modulator * ce)

    def _accumulate(w, tv):
        # VPU-only vreg-shaped accumulation; cross-lane reduce deferred to wrapper.
        loss_ref[...] += w.reshape(-1, SUBLANES, LANES).sum(axis=0)
        if need_tsum:
            tsum_ref[...] += tv.reshape(-1, SUBLANES, LANES).sum(axis=0)

    if tail_valid == tile_elems:
        # No padding anywhere: every real tile is full.  Only skip clamped
        # duplicate tiles (2-core split with an odd tile count re-reads the
        # last tile; it must contribute nothing).
        @pl.when(tile_idx < num_tiles)
        def _all_full():
            _accumulate(weighted, t)
    else:
        @pl.when(tile_idx < num_tiles - 1)
        def _interior():
            _accumulate(weighted, t)            # no mask work on interior tiles

        @pl.when(tile_idx == num_tiles - 1)
        def _tail():
            # Mask built only for the tail tile: local per-tile index vs the
            # static count of real elements (no int32 global-index overflow).
            row_ids = jax.lax.broadcasted_iota(jnp.int32, (tile_rows, lanes), 0)
            lane_ids = jax.lax.broadcasted_iota(jnp.int32, (tile_rows, lanes), 1)
            valid = (row_ids * lanes + lane_ids) < tail_valid
            _accumulate(jnp.where(valid, weighted, 0.0),
                        jnp.where(valid, t, 0.0) if need_tsum else t)


def focal_loss(preds, targets, *, alpha, gamma, normalize, max_tile_rows=None):
    assert preds.shape == targets.shape
    n = int(preds.size)

    num_cores = _num_tensorcores()
    if max_tile_rows is None:
        # 1 MiB (v5e/v6e) / 2 MiB (v7x) f32 input blocks: large enough that the
        # fixed per-grid-step overhead is <10% of the per-step DMA time, small
        # enough that 2 inputs x 3 buffers stays far below the VMEM budget.
        max_tile_rows = 4096 if num_cores == 2 else 2048

    # Flatten; pad (only if needed) to a multiple of 8*128 so the lane-dense 2D
    # view has a sublane-aligned row count.  Padding is masked in-kernel.
    chunk = SUBLANES * LANES
    n_pad = _round_up(max(n, chunk), chunk)
    p_flat = preds.reshape(-1)
    t_flat = targets.reshape(-1)
    if n_pad != n:
        p_flat = jnp.pad(p_flat, (0, n_pad - n))
        t_flat = jnp.pad(t_flat, (0, n_pad - n))

    rows = n_pad // LANES                    # multiple of 8
    p2 = p_flat.reshape(rows, LANES)
    t2 = t_flat.reshape(rows, LANES)

    tile_rows = min(max_tile_rows, rows)     # multiple of 8
    num_tiles = _cdiv(rows, tile_rows)
    if num_tiles < 2:
        num_cores = 1
    tiles_per_core = _cdiv(num_tiles, num_cores)
    # Real elements in the last tile (everything past it is padding — from the
    # wrapper pad and/or the final partial Pallas block — and is masked).
    tail_valid = n - (num_tiles - 1) * tile_rows * LANES
    need_tsum = bool(normalize)

    # Index map: only the 2-core split with an odd tile count needs the clamp
    # (the clamped duplicate tile is skipped entirely inside the kernel).
    if num_cores == 1:
        def tile_map(c, i):
            return (i, 0)
    elif num_cores * tiles_per_core > num_tiles:
        def tile_map(c, i):
            return (jnp.minimum(c * tiles_per_core + i, num_tiles - 1), 0)
    else:
        def tile_map(c, i):
            return (c * tiles_per_core + i, 0)

    kernel = functools.partial(
        _focal_kernel, alpha=float(alpha), gamma=float(gamma),
        num_tiles=num_tiles, tiles_per_core=tiles_per_core,
        tail_valid=tail_valid, need_tsum=need_tsum)

    part_shape = jax.ShapeDtypeStruct((num_cores * SUBLANES, LANES), jnp.float32)
    out_spec = pl.BlockSpec((SUBLANES, LANES), lambda c, i: (c, 0))
    if need_tsum:
        out_shape = (part_shape, part_shape)
        out_specs = [out_spec, out_spec]
    else:
        out_shape = part_shape
        out_specs = out_spec

    if num_cores == 2:
        # Guarantee the 2-TensorCore shard on v7x ("parallel" alone does not
        # reliably core-split); reduction axis stays arbitrary.
        dim_sem = (pltpu.CORE_PARALLEL, pltpu.ARBITRARY)
    else:
        dim_sem = ("arbitrary", "arbitrary")

    def run(buffered):
        if buffered:
            in_spec = pl.BlockSpec((tile_rows, LANES), tile_map,
                                   pipeline_mode=pl.Buffered(3))
        else:
            in_spec = pl.BlockSpec((tile_rows, LANES), tile_map)
        return pl.pallas_call(
            kernel,
            out_shape=out_shape,
            grid_spec=pltpu.PrefetchScalarGridSpec(
                num_scalar_prefetch=0,
                grid=(num_cores, tiles_per_core),
                in_specs=[in_spec, in_spec],
                out_specs=out_specs,
            ),
            compiler_params=pltpu.CompilerParams(
                dimension_semantics=dim_sem,
                vmem_limit_bytes=VMEM_LIMIT_BYTES),
        )(p2, t2)

    try:
        result = run(buffered=True)
    except Exception:
        # Fallback for jax versions without pipeline_mode=pl.Buffered support.
        result = run(buffered=False)

    if need_tsum:
        loss_parts, tsum_parts = result
        # Matches the PyTorch module exactly: no clamp on targets.sum().
        return jnp.sum(loss_parts) / jnp.sum(tsum_parts)
    return jnp.sum(result)


def _ref_focal_loss(preds, targets, *, alpha, gamma, normalize):
    # Pure-JAX reference (stable softplus form; matches PyTorch except where the
    # literal PyTorch modulator expression overflows for x << 0).
    x = preds.astype(jnp.float32)
    t = targets.astype(jnp.float32)
    sp = jnp.log1p(jnp.exp(-jnp.abs(x)))
    ce = jnp.maximum(x, 0.0) - x * t + sp
    if gamma == 0.0:
        weighted = alpha * ce
    else:
        mod = jnp.exp(-gamma * (t * x + sp + jnp.maximum(-x, 0.0)))
        weighted = alpha * (mod * ce)
    fl = jnp.sum(weighted)
    return fl / jnp.sum(t) if normalize else fl


if __name__ == "__main__":
    key = jax.random.PRNGKey(0)
    k1, k2, k3, k4 = jax.random.split(key, 4)

    # NCHW-shaped logits / binary targets
    shape = (2, 4, 16, 16)
    preds = jax.random.normal(k1, shape, dtype=jnp.float32) * 2.0
    targets = (jax.random.uniform(k2, shape) > 0.5).astype(jnp.float32)

    cases = [
        dict(alpha=0.25, gamma=2.0, normalize=True),
        dict(alpha=0.5, gamma=0.0, normalize=False),   # single-output fast path
    ]
    for cfg in cases:
        out = jax.block_until_ready(focal_loss(preds, targets, **cfg))
        ref = _ref_focal_loss(preds, targets, **cfg)
        assert jnp.allclose(out, ref, rtol=1e-5, atol=1e-5), (cfg, out, ref)

    # Multi-tile streaming path (forced small tile).
    out = jax.block_until_ready(
        focal_loss(preds, targets, alpha=0.25, gamma=2.0, normalize=True,
                   max_tile_rows=8))
    ref = _ref_focal_loss(preds, targets, alpha=0.25, gamma=2.0, normalize=True)
    assert jnp.allclose(out, ref, rtol=1e-5, atol=1e-5), (out, ref)

    # Tail-masking path (element count not a multiple of 8*128).
    shape2 = (2, 3, 15, 16)
    preds2 = jax.random.normal(k3, shape2, dtype=jnp.float32) * 2.0
    targets2 = (jax.random.uniform(k4, shape2) > 0.5).astype(jnp.float32)
    out = jax.block_until_ready(
        focal_loss(preds2, targets2, alpha=0.25, gamma=2.0, normalize=True))
    ref = _ref_focal_loss(preds2, targets2, alpha=0.25, gamma=2.0, normalize=True)
    assert jnp.allclose(out, ref, rtol=1e-5, atol=1e-5), (out, ref)

    # bf16 inputs (halves HBM traffic; kernel upcasts in VMEM).
    out = jax.block_until_ready(
        focal_loss(preds.astype(jnp.bfloat16), targets.astype(jnp.bfloat16),
                   alpha=0.25, gamma=2.0, normalize=True))
    ref = _ref_focal_loss(preds.astype(jnp.bfloat16), targets.astype(jnp.bfloat16),
                          alpha=0.25, gamma=2.0, normalize=True)
    assert jnp.allclose(out, ref, rtol=1e-5, atol=1e-5), (out, ref)

    print("KERNEL_OK")
</pallas_src>

<mosaic_0001>
module attributes {stable_mosaic.version = 11 : i64} {
  func.func @_focal_kernel(%arg0: i32, %arg1: i32, %arg2: memref<16x128xf32, #tpu.memory_space<vmem>>, %arg3: memref<16x128xf32, #tpu.memory_space<vmem>>, %arg4: memref<8x128xf32, #tpu.memory_space<vmem>>, %arg5: memref<8x128xf32, #tpu.memory_space<vmem>>) attributes {dimension_semantics = [#tpu.dimension_semantics<arbitrary>, #tpu.dimension_semantics<arbitrary>], iteration_bounds = array<i64: 1, 1>, scalar_prefetch = 0 : i64, scratch_operands = 0 : i64, tpu.core_type = #tpu.core_type<tc>, window_params = [{transform_indices = @transform_0, window_bounds = array<i64: 16, 128>}, {transform_indices = @transform_1, window_bounds = array<i64: 16, 128>}, {transform_indices = @transform_2, window_bounds = array<i64: 8, 128>}, {transform_indices = @transform_3, window_bounds = array<i64: 8, 128>}]} {
    %c1_i32 = arith.constant 1 : i32
    %0 = arith.muli %arg0, %c1_i32 : i32
    %1 = arith.addi %0, %arg1 : i32
    %c0_i32 = arith.constant 0 : i32
    %2 = arith.cmpi eq, %arg1, %c0_i32 : i32
    %3 = arith.extui %2 : i1 to i32
    %c0_i32_0 = arith.constant 0 : i32
    %4 = arith.cmpi ne, %3, %c0_i32_0 : i32
    scf.if %4 {
      %cst_11 = arith.constant 0.000000e+00 : f32
      %32 = vector.broadcast %cst_11 : f32 to vector<8x128xf32>
      %c0_12 = arith.constant 0 : index
      %c0_13 = arith.constant 0 : index
      %33 = vector.load %arg4[%c0_12, %c0_13] : memref<8x128xf32, #tpu.memory_space<vmem>>, vector<8x128xf32>
      tpu.vector_store %arg4[%c0_12, %c0_13], %32 {strides = array<i32>} : memref<8x128xf32, #tpu.memory_space<vmem>>, vector<8x128xf32>,
      %cst_14 = arith.constant 0.000000e+00 : f32
      %34 = vector.broadcast %cst_14 : f32 to vector<8x128xf32>
      %c0_15 = arith.constant 0 : index
      %c0_16 = arith.constant 0 : index
      %35 = vector.load %arg5[%c0_15, %c0_16] : memref<8x128xf32, #tpu.memory_space<vmem>>, vector<8x128xf32>
      tpu.vector_store %arg5[%c0_15, %c0_16], %34 {strides = array<i32>} : memref<8x128xf32, #tpu.memory_space<vmem>>, vector<8x128xf32>,
    } else {
    }
    %c0 = arith.constant 0 : index
    %c0_1 = arith.constant 0 : index
    %5 = vector.load %arg2[%c0, %c0_1] : memref<16x128xf32, #tpu.memory_space<vmem>>, vector<16x128xf32>
    %c0_2 = arith.constant 0 : index
    %c0_3 = arith.constant 0 : index
    %6 = vector.load %arg3[%c0_2, %c0_3] : memref<16x128xf32, #tpu.memory_space<vmem>>, vector<16x128xf32>
    %7 = math.absf %5 : vector<16x128xf32>
    %cst = arith.constant 0.000000e+00 : f32
    %8 = vector.broadcast %cst : f32 to vector<16x128xf32>
    %9 = arith.subf %8, %7 : vector<16x128xf32>
    %10 = math.exp %9 : vector<16x128xf32>
    %11 = math.log1p %10 : vector<16x128xf32>
    %12 = arith.mulf %6, %5 : vector<16x128xf32>
    %cst_4 = arith.constant 0.000000e+00 : f32
    %13 = vector.broadcast %cst_4 : f32 to vector<16x128xf32>
    %14 = arith.maximumf %5, %13 : vector<16x128xf32>
    %15 = arith.subf %14, %12 : vector<16x128xf32>
    %16 = arith.addf %15, %11 : vector<16x128xf32>
    %17 = arith.addf %12, %11 : vector<16x128xf32>
    %cst_5 = arith.constant 0.000000e+00 : f32
    %18 = vector.broadcast %cst_5 : f32 to vector<16x128xf32>
    %19 = arith.subf %18, %5 : vector<16x128xf32>
    %cst_6 = arith.constant 0.000000e+00 : f32
    %20 = vector.broadcast %cst_6 : f32 to vector<16x128xf32>
    %21 = arith.maximumf %19, %20 : vector<16x128xf32>
    %22 = arith.addf %17, %21 : vector<16x128xf32>
    %cst_7 = arith.constant -2.000000e+00 : f32
    %23 = vector.broadcast %cst_7 : f32 to vector<16x128xf32>
    %24 = arith.mulf %23, %22 : vector<16x128xf32>
    %25 = math.exp %24 : vector<16x128xf32>
    %26 = arith.mulf %25, %16 : vector<16x128xf32>
    %cst_8 = arith.constant 2.500000e-01 : f32
    %27 = vector.broadcast %cst_8 : f32 to vector<16x128xf32>
    %28 = arith.mulf %27, %26 : vector<16x128xf32>
    %c1_i32_9 = arith.constant 1 : i32
    %29 = arith.cmpi slt, %1, %c1_i32_9 : i32
    %30 = arith.extui %29 : i1 to i32
    %c0_i32_10 = arith.constant 0 : i32
    %31 = arith.cmpi ne, %30, %c0_i32_10 : i32
    scf.if %31 {
      %c0_11 = arith.constant 0 : index
      %c0_12 = arith.constant 0 : index
      %32 = vector.load %arg4[%c0_11, %c0_12] : memref<8x128xf32, #tpu.memory_space<vmem>>, vector<8x128xf32>
      %33 = vector.shape_cast %28 : vector<16x128xf32> to vector<2x8x128xf32>
      %cst_13 = arith.constant dense<0.000000e+00> : vector<8x128xf32>
      %34 = vector.multi_reduction <add>, %33, %cst_13 [0] : vector<2x8x128xf32> to vector<8x128xf32>
      %35 = arith.addf %32, %34 : vector<8x128xf32>
      %c0_14 = arith.constant 0 : index
      %c0_15 = arith.constant 0 : index
      %36 = vector.load %arg4[%c0_14, %c0_15] : memref<8x128xf32, #tpu.memory_space<vmem>>, vector<8x128xf32>
      tpu.vector_store %arg4[%c0_14, %c0_15], %35 {strides = array<i32>} : memref<8x128xf32, #tpu.memory_space<vmem>>, vector<8x128xf32>,
      %c0_16 = arith.constant 0 : index
      %c0_17 = arith.constant 0 : index
      %37 = vector.load %arg5[%c0_16, %c0_17] : memref<8x128xf32, #tpu.memory_space<vmem>>, vector<8x128xf32>
      %38 = vector.shape_cast %6 : vector<16x128xf32> to vector<2x8x128xf32>
      %cst_18 = arith.constant dense<0.000000e+00> : vector<8x128xf32>
      %39 = vector.multi_reduction <add>, %38, %cst_18 [0] : vector<2x8x128xf32> to vector<8x128xf32>
      %40 = arith.addf %37, %39 : vector<8x128xf32>
      %c0_19 = arith.constant 0 : index
      %c0_20 = arith.constant 0 : index
      %41 = vector.load %arg5[%c0_19, %c0_20] : memref<8x128xf32, #tpu.memory_space<vmem>>, vector<8x128xf32>
      tpu.vector_store %arg5[%c0_19, %c0_20], %40 {strides = array<i32>} : memref<8x128xf32, #tpu.memory_space<vmem>>, vector<8x128xf32>,
    } else {
    }
    return
  }
  func.func @transform_0(%arg0: i32, %arg1: i32) -> (i32, i32) {
    %c0_i32 = arith.constant 0 : i32
    %c0_i32_0 = arith.constant 0 : i32
    return %arg1, %c0_i32 : i32, i32
  }
  func.func @transform_1(%arg0: i32, %arg1: i32) -> (i32, i32) {
    %c0_i32 = arith.constant 0 : i32
    %c0_i32_0 = arith.constant 0 : i32
    return %arg1, %c0_i32 : i32, i32
  }
  func.func @transform_2(%arg0: i32, %arg1: i32) -> (i32, i32) {
    %c0_i32 = arith.constant 0 : i32
    %c0_i32_0 = arith.constant 0 : i32
    return %arg0, %c0_i32 : i32, i32
  }
  func.func @transform_3(%arg0: i32, %arg1: i32) -> (i32, i32) {
    %c0_i32 = arith.constant 0 : i32
    %c0_i32_0 = arith.constant 0 : i32
    return %arg0, %c0_i32 : i32, i32
  }
}

</mosaic_0001>

<bundles_post_ra>
// kernel: tpu_custom_call.1
= control target key start
LH: loop header
LB: loop body
LE: loop exit
PB: predicated region body
PF: predicated region fallthrough
CT: control target
= control target key end

     0   :  { %9 = vsyncpa [#allocation3], 0  ;;  %s305_s0 = inlined_call_operand.hbm [shape: f32[16,128], index: 0, kind: input, shape index: {}]   ;;  %s306_s1 = inlined_call_operand.hbm [shape: f32[16,128], index: 1, kind: input, shape index: {}]   ;;  %s307_s2 = inlined_call_operand.hbm [shape: f32[8,128], index: 2, kind: output, shape index: {0}]   ;;  %s308_s3 = inlined_call_operand.hbm [shape: f32[8,128], index: 3, kind: output, shape index: {1}]  }
   0x1   :  { %10 = vsyncpa [#allocation6], 0 }
   0x2   :  { %11 = vsyncpa [#allocation4], 0 }
   0x3   :  { %12 = vsyncpa [#allocation9], 0  ;;  %s255_s12 = smov [#allocation2]  }
   0x4   :  { %s18_s13 = sshll.u32 %s255_s12, 4  ;;  %s19_s13 = int_to_ptr.vmem [resolvable:$true] %s18_s13 }
   0x5   :  { %s175_s14 = scalar_lea.vmem %s19_s13, 256  ;;  %p180_p1 = scmp.lt.s32.totalorder %s19_s13, %s19_s13 }
   0x6   :  { %p176_p0 = scmp.ne.s32.totalorder %s19_s13, %s175_s14  ;;  %p181_p2 = scmp.lt.s32.totalorder %s175_s14, %s175_s14 }
   0x8   :  { %p182_p3 = por %p181_p2, %p180_p1 }
   0xa   :  { %p183_p4 = pnand %p182_p3, %p176_p0 }
   0xc   :  { %186 = shalt.err (!%p183_p4)
}
   0xd   :  { %s256_s15 = smov 128   ;;  %s257_s16 = smov 8  }
   0xe   :  { %24 = dma.hbm_to_vmem [thread:$0]  %s305_s0, 256, %s19_s13, [#allocation3], %s256_s15, %s256_s15, %s257_s16  }
   0xf   :  { %s258_s19 = smov [#allocation5]  }
  0x10   :  { %s30_s20 = sshll.u32 %s258_s19, 4  ;;  %s31_s20 = int_to_ptr.vmem [resolvable:$true] %s30_s20 }
  0x11   :  { %s195_s21 = scalar_lea.vmem %s31_s20, 256  ;;  %p200_p6 = scmp.lt.s32.totalorder %s31_s20, %s31_s20 }
  0x12   :  { %p196_p5 = scmp.ne.s32.totalorder %s31_s20, %s195_s21  ;;  %p201_p7 = scmp.lt.s32.totalorder %s195_s21, %s195_s21 }
  0x14   :  { %p202_p8 = por %p201_p7, %p200_p6 }
  0x16   :  { %p203_p9 = pnand %p202_p8, %p196_p5 }
  0x18   :  { %206 = shalt.err (!%p203_p9)
}
  0x19   :  { %36 = dma.hbm_to_vmem [thread:$0]  %s306_s1, 256, %s31_s20, [#allocation6], %s256_s15, %s256_s15, %s257_s16  }
  0x1a   :  { %247 = dma.done.wait [#allocation3], 256  }
  0x1b   :  { %248 = vsyncadd [#allocation3], 4294967040 }
  0x1c   :  { %249 = dma.done.wait [#allocation6], 256  }
  0x1d   :  { %250 = vsyncadd [#allocation6], 4294967040  ;;  %v287_v0 = vld [vmem:[#allocation2] sm:$0xff]  ;;  %v289_v1 = vld [vmem:[#allocation2 + $0x8] sm:$0xff]  ;;  %s259_s0 = smov [#allocation8]  }
  0x1e   :  { %v54_v2 = vand.u32 2147483647, %v287_v0  ;;  %v55_v3 = vand.u32 2147483647, %v289_v1  ;;  %v52_v4 = vld [vmem:[#allocation5] sm:$0xff]  ;;  %v53_v5 = vld [vmem:[#allocation5 + $0x8] sm:$0xff] }
  0x1f   :  { %s134_s24 = sshll.u32 %s259_s0, 4  ;;  %v115_v8 = vadd.f32 %v53_v5, %v52_v4  ;;  %s135_s24 = int_to_ptr.vmem [resolvable:$true] %s134_s24 }
  0x20   :  { %v56_v6 = vsub.f32 0.0, %v54_v2  ;;  %v57_v7 = vsub.f32 0.0, %v55_v3  ;;  %s207_s1 = scalar_lea.vmem %s135_s24, 128  ;;  %p212_p11 = scmp.lt.s32.totalorder %s135_s24, %s135_s24 }
  0x21   :  { %117 = vst [vmem:[#allocation8] sm:$0xff] %v115_v8  ;;  %p208_p10 = scmp.ne.s32.totalorder %s135_s24, %s207_s1  ;;  %p213_p12 = scmp.lt.s32.totalorder %s207_s1, %s207_s1 }
  0x22   :  { %v58_v9 = vmul.f32 1.442695, %v56_v6  ;;  %v60_v10 = vmul.f32 1.442695, %v57_v7 }
  0x23   :  { %p214_p13 = por %p213_p12, %p212_p11 }
  0x24   :  { %155 = vpow2.f32 %v58_v9 }
  0x25   :  { %157 = vpow2.f32 %v60_v10  ;;  %p215_p0 = pnand %p214_p13, %p208_p10 }
  0x27   :  { %218 = shalt.err (!%p215_p0)
}
  0x28   :  { %137 = dma.vmem_to_hbm [thread:$0]  %s135_s24, 128, %s308_s3, [#allocation9]   ;;  %v90_v21 = vsub.f32 0.0, %v287_v0  ;;  %v91_v23 = vsub.f32 0.0, %v289_v1  ;;  %v80_v26 = vmul.f32 %v52_v4, %v287_v0  ;;  %v81_v29 = vmul.f32 %v53_v5, %v289_v1 }
  0x29   :  { %v82_v43 = vmax.f32 %v287_v0, 0.0  ;;  %v83_v44 = vmax.f32 %v289_v1, 0.0  ;;  %s260_s3 = smov [#allocation7]  }
  0x2a   :  { %v92_v31 = vmax.f32 %v90_v21, 0.0  ;;  %v93_v33 = vmax.f32 %v91_v23, 0.0  ;;  %s124_s27 = sshll.u32 %s260_s3, 4  ;;  %s125_s27 = int_to_ptr.vmem [resolvable:$true] %s124_s27 }
  0x2b   :  { %v84_v45 = vsub.f32 %v82_v43, %v80_v26  ;;  %v85_v46 = vsub.f32 %v83_v44, %v81_v29  ;;  %s227_s28 = scalar_lea.vmem %s125_s27, 128  ;;  %p232_p2 = scmp.lt.s32.totalorder %s125_s27, %s125_s27 }
  0x2c   :  { %p228_p1 = scmp.ne.s32.totalorder %s125_s27, %s227_s28  ;;  %p233_p3 = scmp.lt.s32.totalorder %s227_s28, %s227_s28 }
  0x2e   :  { %p234_p4 = por %p233_p3, %p232_p2 }
  0x30   :  { %p235_p5 = pnand %p234_p4, %p228_p1 }
  0x31   :  { %v156_v11 = vpop.eup %155 }
  0x32   :  { %v158_v12 = vpop.eup %157  ;;  %v62_v13 = vadd.f32 1.0, %v156_v11  ;;  %v65_v15 = vmul.f32 -0.5, %v156_v11  ;;  %v68_v18 = vand.u32 2147483647, %v156_v11 }
  0x33   :  { %v71_v14 = vadd.f32 1.0, %v158_v12  ;;  %v74_v16 = vmul.f32 -0.5, %v158_v12  ;;  %v77_v20 = vand.u32 2147483647, %v158_v12 }
  0x34   :  { %159 = vlog2.f32 %v62_v13  ;;  %v66_v17 = vadd.f32 1.0, %v65_v15  ;;  %vm69_vm0 = vcmp.lt.f32.partialorder %v68_v18, 0.0004427343 }
  0x35   :  { %161 = vlog2.f32 %v71_v14  ;;  %v75_v19 = vadd.f32 1.0, %v74_v16  ;;  %vm78_vm1 = vcmp.lt.f32.partialorder %v77_v20, 0.0004427343 }
  0x36   :  { %v67_v22 = vmul.f32 %v156_v11, %v66_v17 }
  0x37   :  { %v76_v25 = vmul.f32 %v158_v12, %v75_v19 }
  0x41   :  { %v160_v24 = vpop.eup %159 }
  0x42   :  { %v162_v27 = vpop.eup %161  ;;  %v64_v28 = vmul.f32 0.6931472, %v160_v24 }
  0x43   :  { %v73_v30 = vmul.f32 0.6931472, %v162_v27 }
  0x44   :  { %v70_v32 = vsel %vm69_vm0, %v67_v22, %v64_v28 }
  0x45   :  { %v79_v34 = vsel %vm78_vm1, %v76_v25, %v73_v30  ;;  %v88_v35 = vadd.f32 %v80_v26, %v70_v32  ;;  %v86_v47 = vadd.f32 %v84_v45, %v70_v32 }
  0x46   :  { %v89_v36 = vadd.f32 %v81_v29, %v79_v34  ;;  %v87_v48 = vadd.f32 %v85_v46, %v79_v34 }
  0x47   :  { %v94_v37 = vadd.f32 %v92_v31, %v88_v35 }
  0x48   :  { %v95_v38 = vadd.f32 %v93_v33, %v89_v36 }
  0x49   :  { %v96_v39 = vmul.f32 -2.0, %v94_v37 }
  0x4a   :  { %v97_v40 = vmul.f32 -2.0, %v95_v38 }
  0x4b   :  { %v98_v41 = vmul.f32 1.442695, %v96_v39 }
  0x4c   :  { %v100_v42 = vmul.f32 1.442695, %v97_v40 }
  0x4d   :  { %163 = vpow2.f32 %v98_v41 }
  0x4e   :  { %165 = vpow2.f32 %v100_v42 }
  0x5a   :  { %v164_v49 = vpop.eup %163 }
  0x5b   :  { %v166_v50 = vpop.eup %165  ;;  %v102_v51 = vmul.f32 %v164_v49, %v86_v47 }
  0x5c   :  { %v103_v52 = vmul.f32 %v166_v50, %v87_v48 }
  0x5d   :  { %v104_v53 = vmul.f32 0.25, %v102_v51 }
  0x5e   :  { %v105_v54 = vmul.f32 0.25, %v103_v52 }
  0x60   :  { %v111_v55 = vadd.f32 %v105_v54, %v104_v53 }
  0x62   :  { %113 = vst [vmem:[#allocation7] sm:$0xff] %v111_v55 }
  0x63   :  { %238 = shalt.err (!%p235_p5)
}
  0x64   :  { %127 = dma.vmem_to_hbm [thread:$0]  %s125_s27, 128, %s307_s2, [#allocation4]  }
  0x65   :  { %251 = dma.done.wait [#allocation4], 128  }
  0x66   :  { %252 = vsyncadd [#allocation4], 4294967168 }
  0x67   :  { %253 = dma.done.wait [#allocation9], 128  }
  0x68   :  { %254 = vsyncadd [#allocation9], 4294967168 }
  0x69   :  { %144 = vsyncpa [#allocation3], 1 }
  0x6a   :  { %145 = vsyncpa [#allocation6], 1 }
  0x6b   :  { %146 = vsyncpa [#allocation4], 1 }
  0x6c   :  { %147 = vsyncpa [#allocation9], 1 }

</bundles_post_ra>
